<compile_context>
chip_gen: v7x
topology: tpu7x:2x2x1
jax: 0.10.0
libtpu: 0.0.40
codegen_flags: <defaults>
</compile_context>

<pallas_src>
import numpy as np

import jax
import jax.numpy as jnp
from jax import lax
from jax.experimental import pallas as pl
from jax.experimental.pallas import tpu as pltpu

# ---------------- problem sizes (torch.rand(2, 1, 11, 18), ConvT(1,1,7,s=2,p=1))
B, C_IN, H_IN, W_IN = 2, 1, 11, 18
K = 7
STRIDE = 2
PAD = 1

H_OUT = (H_IN - 1) * STRIDE - 2 * PAD + K      # 25
W_OUT = (W_IN - 1) * STRIDE - 2 * PAD + K      # 39

MPH = (H_OUT + 1) // 2                         # 13 rows per row phase
NPH = (W_OUT + 1) // 2                         # 20 cols per col phase
LANES = 128

# zero-padded input slab (built in the wrapper, never in the kernel)
ROW_OFF, COL_OFF = 2, 2
HP = ROW_OFF + H_IN + 3                        # 16
WP = COL_OFF + W_IN + 4                        # 24

# polyphase row taps: slot s uses window shift ROW_SHIFT[s] and weight row KY_ORDER[s]
#   even output rows (phase 0): ky in {1,3,5}; odd output rows (phase 1): ky in {0,2,4,6}
ROW_SHIFT0 = (2, 1, 0)
ROW_SHIFT1 = (3, 2, 1, 0)
_KY_ORDER = (1, 3, 5, 0, 2, 4, 6)

# column taps: even output cols ox=2n use (cs, kx) in {(2,1),(1,3),(0,5)},
#              odd  output cols ox=2n+1 use (cs, kx) in {(3,0),(2,2),(1,4),(0,6)}
_COL_TAPS_EVEN = ((2, 1), (1, 3), (0, 5))
_COL_TAPS_ODD = ((3, 0), (2, 2), (1, 4), (0, 6))

# static 0/1 diagonal pattern: _DIAG[kx, q, ox] = 1 iff slab column q feeds output
# lane ox through column tap kx (column structure is identical for every weight row)
_DIAG = np.zeros((K, WP, LANES), np.float32)
for _n in range(NPH):
    for _cs, _kx in _COL_TAPS_EVEN:
        _DIAG[_kx, _cs + _n, 2 * _n] = 1.0
    if 2 * _n + 1 < W_OUT:
        for _cs, _kx in _COL_TAPS_ODD:
            _DIAG[_kx, _cs + _n, 2 * _n + 1] = 1.0

# static 0/1 row-interleave + batch-deinterleave selection matrix (64, 64):
#   output row (b, oy)  ->  phase slab row  (oy%2)*32 + b*MPH + oy//2
_SEL = np.zeros((2 * 32, 64), np.float32)
for _b in range(B):
    for _oy in range(H_OUT):
        _SEL[_b * 32 + _oy, (_oy % 2) * 32 + _b * MPH + _oy // 2] = 1.0


def _convt_mxu_kernel(lhs_ref, rhs_ref, sel_ref, bias_ref, o_ref):
    """lhs_ref : (64, 168)  f32 VMEM -- batched row-tap windows of the input
       rhs_ref : (168, 128) f32 VMEM -- banded weights * 0.5, column-interleaved
       sel_ref : (64, 64)   f32 VMEM -- 0/1 row interleave / batch deinterleave
       bias_ref: (1,)       f32 SMEM
       o_ref   : (B, 1, H_OUT, W_OUT) f32 VMEM -- exact output, no padding
    """
    # v2 = 0.5 * conv_transpose(x)  (scale folded into rhs, bias*0.5 added here)
    v2 = jnp.dot(lhs_ref[...], rhs_ref[...],
                 preferred_element_type=jnp.float32) + bias_ref[0] * 0.5
    # fused epilogue: v2 * (tanh(v2) + 1)   -- pointwise, commutes with interleave
    act = v2 * (jnp.tanh(v2) + 1.0)
    # interleave even/odd output rows and split the two batch elements (exact 0/1 dot)
    out = jnp.dot(sel_ref[...], act, preferred_element_type=jnp.float32)
    for b in range(B):
        o_ref[b, 0] = out[b * 32:b * 32 + H_OUT, :W_OUT]


@jax.jit
def model_forward(x_nchw, weight, bias):
    """x_nchw: (B, 1, H_IN, W_IN); weight: (1, 1, K, K); bias: (1,)
       returns (B, 1, H_OUT, W_OUT) f32."""
    x = x_nchw.astype(jnp.float32)

    # ---- layout plumbing only (no arithmetic): pad + gather the 7 row-tap windows
    xpad = jnp.pad(x[:, 0], ((0, 0),
                             (ROW_OFF, HP - ROW_OFF - H_IN),
                             (COL_OFF, WP - COL_OFF - W_IN)))          # (B, 16, 24)
    p0 = jnp.concatenate([xpad[:, rs:rs + MPH, :] for rs in ROW_SHIFT0],
                         axis=-1).reshape(B * MPH, 3 * WP)             # (26, 72)
    p1 = jnp.concatenate([xpad[:, rs:rs + MPH, :] for rs in ROW_SHIFT1],
                         axis=-1).reshape(B * MPH, 4 * WP)             # (26, 96)
    lhs = jnp.zeros((2, 32, K * WP), jnp.float32)
    lhs = lhs.at[0, :B * MPH, :3 * WP].set(p0)                         # even-row phase
    lhs = lhs.at[1, :B * MPH, 3 * WP:].set(p1)                         # odd-row  phase
    lhs = lhs.reshape(2 * 32, K * WP)                                  # (64, 168)

    # ---- banded weight operand: fold taps, 0.5 scale and column interleave.
    #      Each rhs entry is a single weight * {0,1}, and HIGHEST keeps it exact.
    w2 = 0.5 * weight[0, 0].astype(jnp.float32)                        # (7, 7)
    w_rows = jnp.stack([w2[ky] for ky in _KY_ORDER])                   # (7, 7) slot order
    rhs = jnp.einsum('sk,kqo->sqo', w_rows, jnp.asarray(_DIAG),
                     precision=lax.Precision.HIGHEST).reshape(K * WP, LANES)

    sel = jnp.asarray(_SEL)

    flops = 2 * 64 * (K * WP) * LANES + 2 * 64 * 64 * LANES + 4 * 64 * LANES
    bytes_accessed = 4 * (lhs.size + rhs.size + sel.size + 1 + B * H_OUT * W_OUT)

    return pl.pallas_call(
        _convt_mxu_kernel,
        out_shape=jax.ShapeDtypeStruct((B, 1, H_OUT, W_OUT), jnp.float32),
        in_specs=[
            pl.BlockSpec(memory_space=pltpu.MemorySpace.VMEM),   # lhs
            pl.BlockSpec(memory_space=pltpu.MemorySpace.VMEM),   # rhs
            pl.BlockSpec(memory_space=pltpu.MemorySpace.VMEM),   # sel
            pl.BlockSpec(memory_space=pltpu.MemorySpace.SMEM),   # bias
        ],
        out_specs=pl.BlockSpec(memory_space=pltpu.MemorySpace.VMEM),
        cost_estimate=pl.CostEstimate(flops=flops,
                                      transcendentals=64 * LANES,
                                      bytes_accessed=bytes_accessed),
    )(lhs, rhs, sel, bias.astype(jnp.float32))


def _reference(x_nchw, weight, bias):
    """Pure-JAX reference for ConvTranspose2d(1,1,7,stride=2,padding=1) + chain."""
    pp = K - 1 - PAD
    w_flip = jnp.flip(weight, axis=(-1, -2)).astype(jnp.float32)
    v1 = lax.conv_general_dilated(
        x_nchw.astype(jnp.float32), w_flip,
        window_strides=(1, 1),
        padding=[(pp, pp), (pp, pp)],
        lhs_dilation=(STRIDE, STRIDE),
        dimension_numbers=("NCHW", "OIHW", "NCHW"),
        precision=lax.Precision.HIGHEST,
    ) + bias.reshape(1, -1, 1, 1)
    v2 = v1 * 0.5
    return v2 * (jnp.tanh(v2) + 1.0)


if __name__ == "__main__":
    key = jax.random.PRNGKey(0)
    kx, kw, kb = jax.random.split(key, 3)

    x1 = jax.random.uniform(kx, (B, C_IN, H_IN, W_IN), dtype=jnp.float32)
    # deterministic synthetic parameters (ConvTranspose2d weight (1,1,7,7), bias (1,))
    fan = C_IN * K * K
    bound = 1.0 / (fan ** 0.5)
    weight = jax.random.uniform(kw, (1, 1, K, K), minval=-bound, maxval=bound,
                                dtype=jnp.float32)
    bias = jax.random.uniform(kb, (1,), minval=-bound, maxval=bound, dtype=jnp.float32)

    out = jax.block_until_ready(model_forward(x1, weight, bias))
    ref = jax.block_until_ready(_reference(x1, weight, bias))

    assert out.shape == (B, 1, H_OUT, W_OUT), out.shape
    max_err = float(jnp.max(jnp.abs(out - ref)))
    assert jnp.allclose(out, ref, atol=1e-4, rtol=1e-4), max_err

    print("KERNEL_OK")
</pallas_src>

<mosaic_0001>
module attributes {stable_mosaic.version = 11 : i64} {
  func.func @_convt_mxu_kernel(%arg0: memref<64x168xf32, #tpu.memory_space<vmem>>, %arg1: memref<168x128xf32, #tpu.memory_space<vmem>>, %arg2: memref<64x64xf32, #tpu.memory_space<vmem>>, %arg3: memref<1xf32, #tpu.memory_space<smem>>, %arg4: memref<2x1x25x39xf32, #tpu.memory_space<vmem>>) attributes {dimension_semantics = [], scalar_prefetch = 0 : i64, scratch_operands = 0 : i64, tpu.core_type = #tpu.core_type<tc>} {
    %c0 = arith.constant 0 : index
    %c0_0 = arith.constant 0 : index
    %0 = vector.load %arg0[%c0, %c0_0] : memref<64x168xf32, #tpu.memory_space<vmem>>, vector<64x168xf32>
    %c0_1 = arith.constant 0 : index
    %c0_2 = arith.constant 0 : index
    %1 = vector.load %arg1[%c0_1, %c0_2] : memref<168x128xf32, #tpu.memory_space<vmem>>, vector<168x128xf32>
    %cst = arith.constant dense<0.000000e+00> : vector<64x128xf32>
    %2 = tpu.matmul %0, %1, %cst {dimension_numbers = #tpu.dot_dimension_numbers<[1], [0], [0], [1], [0, 0, 1, 1], [], []>} : vector<64x168xf32>, vector<168x128xf32>, vector<64x128xf32> -> vector<64x128xf32>
    %c0_3 = arith.constant 0 : index
    %3 = memref.load %arg3[%c0_3] : memref<1xf32, #tpu.memory_space<smem>>
    %cst_4 = arith.constant 5.000000e-01 : f32
    %4 = arith.mulf %3, %cst_4 : f32
    %5 = vector.broadcast %4 : f32 to vector<64x128xf32>
    %6 = arith.addf %2, %5 : vector<64x128xf32>
    %7 = math.tanh %6 : vector<64x128xf32>
    %cst_5 = arith.constant 1.000000e+00 : f32
    %8 = vector.broadcast %cst_5 : f32 to vector<64x128xf32>
    %9 = arith.addf %7, %8 : vector<64x128xf32>
    %10 = arith.mulf %6, %9 : vector<64x128xf32>
    %c0_6 = arith.constant 0 : index
    %c0_7 = arith.constant 0 : index
    %11 = vector.load %arg2[%c0_6, %c0_7] : memref<64x64xf32, #tpu.memory_space<vmem>>, vector<64x64xf32>
    %cst_8 = arith.constant dense<0.000000e+00> : vector<64x128xf32>
    %12 = tpu.matmul %11, %10, %cst_8 {dimension_numbers = #tpu.dot_dimension_numbers<[1], [0], [0], [1], [0, 0, 1, 1], [], []>} : vector<64x64xf32>, vector<64x128xf32>, vector<64x128xf32> -> vector<64x128xf32>
    %13 = vector.extract_strided_slice %12 {offsets = [0, 0], sizes = [25, 39], strides = [1, 1]} : vector<64x128xf32> to vector<25x39xf32>
    %c0_9 = arith.constant 0 : index
    %c0_10 = arith.constant 0 : index
    %c0_11 = arith.constant 0 : index
    %c0_12 = arith.constant 0 : index
    %14 = vector.load %arg4[%c0_9, %c0_10, %c0_11, %c0_12] : memref<2x1x25x39xf32, #tpu.memory_space<vmem>>, vector<1x1x25x39xf32>
    %15 = vector.shape_cast %14 : vector<1x1x25x39xf32> to vector<25x39xf32>
    %16 = vector.shape_cast %13 : vector<25x39xf32> to vector<1x1x25x39xf32>
    tpu.vector_store %arg4[%c0_9, %c0_10, %c0_11, %c0_12], %16 {strides = array<i32>} : memref<2x1x25x39xf32, #tpu.memory_space<vmem>>, vector<1x1x25x39xf32>,
    %17 = vector.extract_strided_slice %12 {offsets = [32, 0], sizes = [25, 39], strides = [1, 1]} : vector<64x128xf32> to vector<25x39xf32>
    %c1 = arith.constant 1 : index
    %c0_13 = arith.constant 0 : index
    %c0_14 = arith.constant 0 : index
    %c0_15 = arith.constant 0 : index
    %18 = vector.load %arg4[%c1, %c0_13, %c0_14, %c0_15] : memref<2x1x25x39xf32, #tpu.memory_space<vmem>>, vector<1x1x25x39xf32>
    %19 = vector.shape_cast %18 : vector<1x1x25x39xf32> to vector<25x39xf32>
    %20 = vector.shape_cast %17 : vector<25x39xf32> to vector<1x1x25x39xf32>
    tpu.vector_store %arg4[%c1, %c0_13, %c0_14, %c0_15], %20 {strides = array<i32>} : memref<2x1x25x39xf32, #tpu.memory_space<vmem>>, vector<1x1x25x39xf32>,
    return
  }
}

</mosaic_0001>

<bundles_post_ra>
// kernel: model_forward.1
= control target key start
LH: loop header
LB: loop body
LE: loop exit
PB: predicated region body
PF: predicated region fallthrough
CT: control target
= control target key end

     0   :  { %v493_v0 = vmov 0.0|0.0   ;;  %vm58_vm0 = vcmask 326656   ;;  %v494_v32 = vmov 0.0   ;;  %vm220_vm1 = vcmask 523264   ;;  %s704_s1 = inlined_call_operand.vmem [shape: f32[168,128], index: 1, kind: input, shape index: {}]   ;;  %s705_s0 = inlined_call_operand.vmem [shape: f32[64,168], index: 0, kind: input, shape index: {}]   ;;  %s706_s2 = inlined_call_operand.vmem [shape: f32[64,64], index: 2, kind: input, shape index: {}]   ;;  %s707_s3 = inlined_call_operand.<no memory space> [shape: f32[1], index: 3, kind: input, shape index: {}]   ;;  %s708_s4 = inlined_call_operand.vmem [shape: f32[2,1,25,39], index: 4, kind: output, shape index: {}]  }
   0x1   :  { %429 = vmatprep.subr.bf16.mxu0 %v493_v0  ;;  %v34_v1 = vld [vmem:[%s704_s1] sm:$0xff]  ;;  %v35_v2 = vld [vmem:[%s704_s1 + $0x8] sm:$0xff]  ;;  %v36_v3 = vld [vmem:[%s704_s1 + $0x10] sm:$0xff]  ;;  %s56_s14 = smul.f32 0.5, %s707_s3  ;;  %vm350_vm2 = vcmask 318464   ;;  %vm354_vm3 = vcmask 311296  }
   0x2   :  { %v430_v4 = vpack.c.bf16 %v35_v2, %v34_v1  ;;  %v37_v5 = vld [vmem:[%s704_s1 + $0x18] sm:$0xff]  ;;  %v38_v7 = vld [vmem:[%s704_s1 + $0x20] sm:$0xff]  ;;  %v39_v8 = vld [vmem:[%s704_s1 + $0x28] sm:$0xff] }
   0x3   :  { %v433_v6 = vpack.c.bf16 %v37_v5, %v36_v3  ;;  %v436_v9 = vpack.c.bf16 %v39_v8, %v38_v7  ;;  %v19_v10 = vld [vmem:[%s705_s0 + $0x8] sm:$0xff]  ;;  %v40_v11 = vld [vmem:[%s704_s1 + $0x30] sm:$0xff]  ;;  %v41_v12 = vld [vmem:[%s704_s1 + $0x38] sm:$0xff]  ;;  %v57_v50 = vstv %s56_s14 }
   0x4   :  { %431 = vmatpush1.bf16.msra.mxu0 %v430_v4  ;;  %365 = vmatprep.mubr.msk.f32.mxu0 %vm58_vm0, %v19_v10  ;;  %v439_v13 = vpack.c.bf16 %v41_v12, %v40_v11  ;;  %v42_v14 = vld [vmem:[%s704_s1 + $0x40] sm:$0xff]  ;;  %v43_v15 = vld [vmem:[%s704_s1 + $0x48] sm:$0xff]  ;;  %v44_v17 = vld [vmem:[%s704_s1 + $0x50] sm:$0xff] }
   0x5   :  { %432 = vmatprep.subr.bf16.mxu0 %v493_v0  ;;  %v442_v16 = vpack.c.bf16 %v43_v15, %v42_v14  ;;  %v45_v18 = vld [vmem:[%s704_s1 + $0x58] sm:$0xff]  ;;  %v46_v20 = vld [vmem:[%s704_s1 + $0x60] sm:$0xff]  ;;  %v47_v21 = vld [vmem:[%s704_s1 + $0x68] sm:$0xff] }
   0x6   :  { %v445_v19 = vpack.c.bf16 %v45_v18, %v44_v17  ;;  %v448_v22 = vpack.c.bf16 %v47_v21, %v46_v20  ;;  %v48_v23 = vld [vmem:[%s704_s1 + $0x70] sm:$0xff]  ;;  %v49_v24 = vld [vmem:[%s704_s1 + $0x78] sm:$0xff]  ;;  %v50_v26 = vld [vmem:[%s704_s1 + $0x80] sm:$0xff] }
   0x7   :  { %v451_v25 = vpack.c.bf16 %v49_v24, %v48_v23  ;;  %v51_v27 = vld [vmem:[%s704_s1 + $0x88] sm:$0xff]  ;;  %v52_v29 = vld [vmem:[%s704_s1 + $0x90] sm:$0xff]  ;;  %v53_v30 = vld [vmem:[%s704_s1 + $0x98] sm:$0xff] }
   0x8   :  { %434 = vmatpush1.bf16.msra.mxu0 %v433_v6  ;;  %v454_v28 = vpack.c.bf16 %v51_v27, %v50_v26  ;;  %v457_v31 = vpack.c.bf16 %v53_v30, %v52_v29  ;;  %v54_v33 = vld [vmem:[%s704_s1 + $0xa0] sm:$0xff]  ;;  %v21_v35 = vld [vmem:[%s705_s0 + $0x18] sm:$0xff]  ;;  %v20_v36 = vld [vmem:[%s705_s0 + $0x10] sm:$0xff] }
   0x9   :  { %435 = vmatprep.subr.bf16.mxu0 %v493_v0  ;;  %v18_v34 = vld [vmem:[%s705_s0] sm:$0xff]  ;;  %v23_v37 = vld [vmem:[%s705_s0 + $0x28] sm:$0xff]  ;;  %v25_v39 = vld [vmem:[%s705_s0 + $0x38] sm:$0xff] }
   0xa   :  { %v22_v38 = vld [vmem:[%s705_s0 + $0x20] sm:$0xff]  ;;  %v24_v40 = vld [vmem:[%s705_s0 + $0x30] sm:$0xff]  ;;  %v27_v41 = vld [vmem:[%s705_s0 + $0x48] sm:$0xff] }
   0xb   :  { %v26_v42 = vld [vmem:[%s705_s0 + $0x40] sm:$0xff]  ;;  %v29_v43 = vld [vmem:[%s705_s0 + $0x58] sm:$0xff]  ;;  %v28_v44 = vld [vmem:[%s705_s0 + $0x50] sm:$0xff] }
   0xc   :  { %437 = vmatpush1.bf16.msra.mxu0 %v436_v9  ;;  %v31_v45 = vld [vmem:[%s705_s0 + $0x68] sm:$0xff]  ;;  %v30_v46 = vld [vmem:[%s705_s0 + $0x60] sm:$0xff]  ;;  %v33_v47 = vld [vmem:[%s705_s0 + $0x78] sm:$0xff] }
   0xd   :  { %438 = vmatprep.subr.bf16.mxu0 %v493_v0  ;;  %v32_v48 = vld [vmem:[%s705_s0 + $0x70] sm:$0xff]  ;;  %v212_v49 = vld [vmem:[%s706_s2] sm:$0xff] }
   0xe   :  { %417 = vmatprep.mubr.msk.f32.mxu1 %vm220_vm1, %v212_v49 }
  0x10   :  { %440 = vmatpush1.bf16.msra.mxu0 %v439_v13 }
  0x11   :  { %441 = vmatprep.subr.bf16.mxu0 %v493_v0 }
  0x14   :  { %443 = vmatpush1.bf16.msra.mxu0 %v442_v16 }
  0x15   :  { %444 = vmatprep.subr.bf16.mxu0 %v493_v0 }
  0x18   :  { %446 = vmatpush1.bf16.msra.mxu0 %v445_v19 }
  0x19   :  { %447 = vmatprep.subr.bf16.mxu0 %v493_v0 }
  0x1c   :  { %449 = vmatpush1.bf16.msra.mxu0 %v448_v22 }
  0x1d   :  { %450 = vmatprep.subr.bf16.mxu0 %v493_v0 }
  0x20   :  { %452 = vmatpush1.bf16.msra.mxu0 %v451_v25 }
  0x21   :  { %453 = vmatprep.subr.bf16.mxu0 %v493_v0 }
  0x24   :  { %455 = vmatpush1.bf16.msra.mxu0 %v454_v28 }
  0x25   :  { %456 = vmatprep.subr.bf16.mxu0 %v493_v0 }
  0x28   :  { %458 = vmatpush1.bf16.msra.mxu0 %v457_v31 }
  0x29   :  { %123 = vmatprep.subr.mxu0 %v494_v32 }
  0x2c   :  { %124 = vmatpush1.msra.mxu0 %v54_v33 }
  0x2d   :  { %148 = vmatmul.mubr.f32.vlgmr.msra.gmra.mrb[0].mxu0 %v18_v34 }
  0x2e   :  { %366 = vmatprep.mubr.msk.f32.mxu0 %vm58_vm0, %v21_v35 }
  0x31   :  { %153 = vmatmul.mubr.f32.gmra.mrb[2].mxu0 %v20_v36 }
  0x32   :  { %367 = vmatprep.mubr.msk.f32.mxu0 %vm58_vm0, %v23_v37 }
  0x35   :  { %158 = vmatmul.mubr.f32.gmra.mrb[4].mxu0 %v22_v38 }
  0x36   :  { %368 = vmatprep.mubr.msk.f32.mxu0 %vm58_vm0, %v25_v39  ;;  %v213_v39 = vld [vmem:[%s706_s2 + $0x8] sm:$0xff] }
  0x39   :  { %163 = vmatmul.mubr.f32.gmra.mrb[6].mxu0 %v24_v40  ;;  %v214_v40 = vld [vmem:[%s706_s2 + $0x10] sm:$0xff] }
  0x3a   :  { %369 = vmatprep.mubr.msk.f32.mxu0 %vm58_vm0, %v27_v41  ;;  %v215_v41 = vld [vmem:[%s706_s2 + $0x18] sm:$0xff] }
  0x3d   :  { %168 = vmatmul.mubr.f32.gmra.mrb[8].mxu0 %v26_v42  ;;  %v216_v42 = vld [vmem:[%s706_s2 + $0x20] sm:$0xff] }
  0x3e   :  { %370 = vmatprep.mubr.msk.f32.mxu0 %vm58_vm0, %v29_v43  ;;  %v217_v43 = vld [vmem:[%s706_s2 + $0x28] sm:$0xff] }
  0x41   :  { %173 = vmatmul.mubr.f32.gmra.mrb[10].mxu0 %v28_v44  ;;  %v218_v44 = vld [vmem:[%s706_s2 + $0x30] sm:$0xff] }
  0x42   :  { %371 = vmatprep.mubr.msk.f32.mxu0 %vm58_vm0, %v31_v45  ;;  %v219_v45 = vld [vmem:[%s706_s2 + $0x38] sm:$0xff] }
  0x45   :  { %178 = vmatmul.mubr.f32.gmra.mrb[12].mxu0 %v30_v46 }
  0x46   :  { %372 = vmatprep.mubr.msk.f32.mxu0 %vm58_vm0, %v33_v47 }
  0x49   :  { %183 = vmatmul.mubr.f32.gmra.mrb[14].mxu0 %v32_v48 }
 0x100   :  { %v149_v51 = vpop.f32.mrb[0].mxu0 }
 0x101   :  { %v150_v52 = vadd.f32 %v149_v51, %v57_v50  ;;  %v151_v53 = vpop.f32.mrb[1].mxu0 }
 0x103   :  { %477 = vtanh.f32 %v150_v52 }
 0x104   :  { %v154_v54 = vpop.f32.mrb[2].mxu0 }
 0x105   :  { %v155_v55 = vadd.f32 %v154_v54, %v57_v50  ;;  %v156_v56 = vpop.f32.mrb[3].mxu0 }
 0x107   :  { %479 = vtanh.f32 %v155_v55 }
 0x108   :  { %v159_v57 = vpop.f32.mrb[4].mxu0 }
 0x109   :  { %v160_v58 = vadd.f32 %v159_v57, %v57_v50  ;;  %v161_v59 = vpop.f32.mrb[5].mxu0 }
 0x10b   :  { %481 = vtanh.f32 %v160_v58 }
 0x10c   :  { %v164_v60 = vpop.f32.mrb[6].mxu0 }
 0x10d   :  { %v478_v61 = vpop.eup %477  ;;  %v165_v62 = vadd.f32 %v164_v60, %v57_v50  ;;  %v166_v63 = vpop.f32.mrb[7].mxu0 }
 0x10e   :  { %v196_v0 = vadd.f32 1.0, %v478_v61 }
 0x10f   :  { %483 = vtanh.f32 %v165_v62 }
 0x110   :  { %v169_v1 = vpop.f32.mrb[8].mxu0  ;;  %v204_v6 = vmul.f32 %v196_v0, %v150_v52 }
 0x111   :  { %v480_v2 = vpop.eup %479  ;;  %v170_v3 = vadd.f32 %v169_v1, %v57_v50  ;;  %v171_v4 = vpop.f32.mrb[9].mxu0 }
 0x112   :  { %v197_v5 = vadd.f32 1.0, %v480_v2 }
 0x113   :  { %485 = vtanh.f32 %v170_v3 }
 0x114   :  { %v205_v7 = vmul.f32 %v197_v5, %v155_v55  ;;  %v174_v8 = vpop.f32.mrb[10].mxu0 }
 0x115   :  { %v482_v9 = vpop.eup %481  ;;  %v175_v10 = vadd.f32 %v174_v8, %v57_v50  ;;  %v176_v11 = vpop.f32.mrb[11].mxu0 }
 0x116   :  { %v459_v12 = vpack.c.bf16 %v205_v7, %v204_v6  ;;  %v198_v13 = vadd.f32 1.0, %v482_v9 }
 0x117   :  { %487 = vtanh.f32 %v175_v10 }
 0x118   :  { %v179_v14 = vpop.f32.mrb[12].mxu0  ;;  %460 = vmatprep.subr.bf16.mxu1 %v459_v12  ;;  %v206_v19 = vmul.f32 %v198_v13, %v160_v58 }
 0x119   :  { %v484_v15 = vpop.eup %483  ;;  %v180_v16 = vadd.f32 %v179_v14, %v57_v50  ;;  %v181_v17 = vpop.f32.mrb[13].mxu0  ;;  %462 = vmatpush3.bf16.msra.mxu1 %v459_v12 }
 0x11a   :  { %v199_v18 = vadd.f32 1.0, %v484_v15 }
 0x11b   :  { %489 = vtanh.f32 %v180_v16 }
 0x11c   :  { %v207_v20 = vmul.f32 %v199_v18, %v165_v62  ;;  %v184_v21 = vpop.f32.mrb[14].mxu0 }
 0x11d   :  { %v486_v22 = vpop.eup %485  ;;  %v185_v23 = vadd.f32 %v184_v21, %v57_v50  ;;  %v186_v24 = vpop.f32.mrb[15].mxu0 }
 0x11e   :  { %v463_v25 = vpack.c.bf16 %v207_v20, %v206_v19  ;;  %v200_v26 = vadd.f32 1.0, %v486_v22 }
 0x11f   :  { %491 = vtanh.f32 %v185_v23 }
 0x120   :  { %464 = vmatprep.subr.bf16.mxu1 %v463_v25  ;;  %v208_v29 = vmul.f32 %v200_v26, %v170_v3 }
 0x121   :  { %v488_v27 = vpop.eup %487  ;;  %466 = vmatpush3.bf16.msra.mxu1 %v463_v25 }
 0x122   :  { %v201_v28 = vadd.f32 1.0, %v488_v27 }
 0x124   :  { %v209_v30 = vmul.f32 %v201_v28, %v175_v10 }
 0x125   :  { %v490_v31 = vpop.eup %489 }
 0x126   :  { %v467_v32 = vpack.c.bf16 %v209_v30, %v208_v29  ;;  %v202_v33 = vadd.f32 1.0, %v490_v31 }
 0x128   :  { %468 = vmatprep.subr.bf16.mxu1 %v467_v32  ;;  %v210_v36 = vmul.f32 %v202_v33, %v180_v16 }
 0x129   :  { %v492_v34 = vpop.eup %491  ;;  %470 = vmatpush3.bf16.msra.mxu1 %v467_v32 }
 0x12a   :  { %v203_v35 = vadd.f32 1.0, %v492_v34 }
 0x12c   :  { %v211_v37 = vmul.f32 %v203_v35, %v185_v23 }
 0x12e   :  { %v471_v38 = vpack.c.bf16 %v211_v37, %v210_v36 }
 0x130   :  { %472 = vmatprep.subr.bf16.mxu1 %v471_v38 }
 0x131   :  { %474 = vmatpush3.bf16.msra.mxu1 %v471_v38 }
 0x134   :  { %418 = vmatmul.mubr.msk.f32.vlgmr.msra.gmra.mrb[0].mxu1 %vm220_vm1, %v213_v39 }
 0x135   :  { %420 = vmatprep.mubr.msk.f32.mxu1 %vm220_vm1, %v214_v40 }
 0x138   :  { %421 = vmatmul.mubr.msk.f32.gmra.mrb[2].mxu1 %vm220_vm1, %v215_v41 }
 0x139   :  { %423 = vmatprep.mubr.msk.f32.mxu1 %vm220_vm1, %v216_v42 }
 0x13c   :  { %424 = vmatmul.mubr.msk.f32.gmra.mrb[4].mxu1 %vm220_vm1, %v217_v43 }
 0x13d   :  { %426 = vmatprep.mubr.msk.f32.mxu1 %vm220_vm1, %v218_v44 }
 0x140   :  { %427 = vmatmul.mubr.msk.f32.gmra.mrb[6].mxu1 %vm220_vm1, %v219_v45 }
 0x207   :  { %v419_v46 = vpop.f32.mrb[0].mxu1 }
 0x208   :  { %352 = vst.msk [vmem:[%s708_s4 + $0x8] sm:$0xff] %vm350_vm2, %v419_v46  ;;  %v311_v47 = vpop.f32.mrb[1].mxu1 }
 0x209   :  { %351 = vst.msk [vmem:[%s708_s4] sm:$0xff] %vm350_vm2, %v311_v47 }
 0x20b   :  { %v422_v48 = vpop.f32.mrb[2].mxu1 }
 0x20c   :  { %355 = vst.msk [vmem:[%s708_s4 + $0x18] sm:$0x1] %vm354_vm3, %v422_v48  ;;  %v321_v49 = vpop.f32.mrb[3].mxu1 }
 0x20d   :  { %353 = vst.msk [vmem:[%s708_s4 + $0x10] sm:$0xff] %vm350_vm2, %v321_v49 }
 0x20f   :  { %v425_v50 = vpop.f32.mrb[4].mxu1 }
 0x210   :  { %382 = vst.msk [vmem:[%s708_s4 + $0x28] sm:$0xff] %vm350_vm2, %v425_v50  ;;  %v331_v51 = vpop.f32.mrb[5].mxu1 }
 0x211   :  { %381 = vst.msk [vmem:[%s708_s4 + $0x20] sm:$0xff] %vm350_vm2, %v331_v51 }
 0x213   :  { %v428_v52 = vpop.f32.mrb[6].mxu1 }
 0x214   :  { %384 = vst.msk [vmem:[%s708_s4 + $0x38] sm:$0x1] %vm354_vm3, %v428_v52  ;;  %v341_v53 = vpop.f32.mrb[7].mxu1 }
 0x215   :  { %383 = vst.msk [vmem:[%s708_s4 + $0x30] sm:$0xff] %vm350_vm2, %v341_v53 }

</bundles_post_ra>
